<compile_context>
chip_gen: v6e
topology: v6e:2x2x1
jax: 0.10.0
libtpu: 0.0.40
codegen_flags: <defaults>
</compile_context>

<pallas_src>
import functools

import jax
import jax.numpy as jnp
from jax import lax
from jax.experimental import pallas as pl
from jax.experimental.pallas import tpu as pltpu


def _round_up(a, m):
    return (a + m - 1) // m * m


def _discriminator_kernel(x_ref, w2_ref, b2_ref, w3_ref, b3_ref, o_ref):
    # x_ref : (TB, 32)   w2_ref: (32, 8)   b2_ref: (1, 8)
    # w3_ref: (1, 8)     b3_ref: (1, 1)    o_ref : (1, TB)   <- batch on the lane axis
    x = x_ref[...]

    # Layer l2: Linear(32 -> 8) + ReLU   (MXU, f32 accumulate)
    h = jnp.dot(x, w2_ref[...], preferred_element_type=jnp.float32) + b2_ref[...]
    h = jnp.maximum(h, 0.0)

    # Layer l3: Linear(8 -> 1) + ReLU, computed transposed so the result is
    # lane-dense:  (1, 8) . (TB, 8)^T  ->  (1, TB)
    z = lax.dot_general(
        w3_ref[...], h,
        dimension_numbers=(((1,), (1,)), ((), ())),
        preferred_element_type=jnp.float32,
    ) + b3_ref[...]
    z = jnp.maximum(z, 0.0)

    # Layer l4: Sigmoid. z >= 0 after ReLU so exp(-z) cannot overflow.
    o_ref[...] = (1.0 / (1.0 + jnp.exp(-z))).astype(o_ref.dtype)


@functools.partial(jax.jit, static_argnames=("tile_b",))
def discriminator_shifted(x, w2, b2, w3, b3, *, tile_b=2048):
    """Forward pass of DiscriminatorShifted.

    Args:
      x : (B, 32) float32
      w2: (32, 8) float32   (PyTorch l2.weight.T)
      b2: (8,)    float32
      w3: (8, 1)  float32   (PyTorch l3.weight.T)
      b3: (1,)    float32
      tile_b: batch tile, multiple of 128. A (tile_b, 32) f32 block is only
              tile_b*128 bytes, so double-buffering fits VMEM on v5e/v6e/v7x.
    Returns:
      (B, 1) float32
    """
    B, IN = x.shape
    HID = w2.shape[1]
    assert tile_b % 128 == 0

    # Effective tile: a single full block for small B, tile_b otherwise.
    tb = min(tile_b, _round_up(B, 8))
    b_pad = _round_up(B, tb)
    if b_pad != B:
        x = jnp.pad(x, ((0, b_pad - B), (0, 0)))
    num_tiles = b_pad // tb

    b2_2d = b2.reshape(1, HID)
    w3_row = w3.reshape(1, HID)
    b3_2d = b3.reshape(1, 1)

    cost = pl.CostEstimate(
        flops=2 * b_pad * (IN * HID + HID),
        transcendentals=b_pad,
        bytes_accessed=b_pad * (IN + 1) * 4 + 4 * (IN * HID + 2 * HID + 1),
    )

    out_row = pl.pallas_call(
        _discriminator_kernel,
        out_shape=jax.ShapeDtypeStruct((1, b_pad), jnp.float32),
        grid=(num_tiles,),
        in_specs=[
            pl.BlockSpec((tb, IN), lambda i: (i, 0)),      # x: streamed / pipelined
            pl.BlockSpec((IN, HID), lambda i: (0, 0)),     # weights & biases resident
            pl.BlockSpec((1, HID), lambda i: (0, 0)),
            pl.BlockSpec((1, HID), lambda i: (0, 0)),
            pl.BlockSpec((1, 1), lambda i: (0, 0)),
        ],
        out_specs=pl.BlockSpec((1, tb), lambda i: (0, i)), # lane-dense output row
        compiler_params=pltpu.CompilerParams(
            dimension_semantics=("parallel",),             # v7x: shard tiles over 2 TCs
        ),
        cost_estimate=cost,
    )(x, w2, b2_2d, w3_row, b3_2d)

    return out_row[0, :B].reshape(B, 1)


def _reference(x, w2, b2, w3, b3):
    h = jnp.maximum(x @ w2 + b2, 0.0)
    z = jnp.maximum(h @ w3 + b3, 0.0)
    return jax.nn.sigmoid(z)


if __name__ == "__main__":
    key = jax.random.PRNGKey(0)
    k_x, k_w2, k_b2, k_w3, k_b3 = jax.random.split(key, 5)

    IN, HID, OUT = 32, 8, 1

    # Deterministic PyTorch-style init: U(-1/sqrt(fan_in), 1/sqrt(fan_in))
    lim2 = 1.0 / jnp.sqrt(jnp.float32(IN))
    lim3 = 1.0 / jnp.sqrt(jnp.float32(HID))
    w2 = jax.random.uniform(k_w2, (IN, HID), jnp.float32, -lim2, lim2)
    b2 = jax.random.uniform(k_b2, (HID,), jnp.float32, -lim2, lim2)
    w3 = jax.random.uniform(k_w3, (HID, OUT), jnp.float32, -lim3, lim3)
    b3 = jax.random.uniform(k_b3, (OUT,), jnp.float32, -lim3, lim3)

    # Small, single-tile case (module's native tiny-batch usage).
    # NOTE: at B=8 the plain XLA path is cheaper; the kernel pays off for B in the
    # thousands (it is exercised by the second case below).
    B_small = 8
    x_small = jax.random.normal(k_x, (B_small, IN), dtype=jnp.float32)
    out_small = jax.block_until_ready(discriminator_shifted(x_small, w2, b2, w3, b3))
    ref_small = _reference(x_small, w2, b2, w3, b3)
    assert out_small.shape == (B_small, 1), out_small.shape
    assert jnp.allclose(out_small, ref_small, atol=1e-5, rtol=1e-5)

    # Larger, non-multiple-of-tile batch: exercises the multi-tile pipelined,
    # padded, lane-dense-output path.
    B_big = 4104
    x_big = jax.random.normal(k_x, (B_big, IN), dtype=jnp.float32)
    out_big = jax.block_until_ready(discriminator_shifted(x_big, w2, b2, w3, b3))
    ref_big = _reference(x_big, w2, b2, w3, b3)
    assert out_big.shape == (B_big, 1), out_big.shape
    assert jnp.allclose(out_big, ref_big, atol=1e-5, rtol=1e-5)

    print("KERNEL_OK")
</pallas_src>

<mosaic_0001>
module attributes {stable_mosaic.version = 11 : i64} {
  func.func @_discriminator_kernel(%arg0: i32, %arg1: memref<8x32xf32, #tpu.memory_space<vmem>>, %arg2: memref<32x8xf32, #tpu.memory_space<vmem>>, %arg3: memref<1x8xf32, #tpu.memory_space<vmem>>, %arg4: memref<1x8xf32, #tpu.memory_space<vmem>>, %arg5: memref<1x1xf32, #tpu.memory_space<vmem>>, %arg6: memref<1x8xf32, #tpu.memory_space<vmem>>) attributes {dimension_semantics = [#tpu.dimension_semantics<parallel>], iteration_bounds = array<i64: 1>, scalar_prefetch = 0 : i64, scratch_operands = 0 : i64, tpu.core_type = #tpu.core_type<tc>, window_params = [{transform_indices = @transform_0, window_bounds = array<i64: 8, 32>}, {pipeline_mode = #tpu.pipeline_mode<synchronous>, transform_indices = @transform_1, window_bounds = array<i64: 32, 8>}, {pipeline_mode = #tpu.pipeline_mode<synchronous>, transform_indices = @transform_2, window_bounds = array<i64: 1, 8>}, {pipeline_mode = #tpu.pipeline_mode<synchronous>, transform_indices = @transform_3, window_bounds = array<i64: 1, 8>}, {pipeline_mode = #tpu.pipeline_mode<synchronous>, transform_indices = @transform_4, window_bounds = array<i64: 1, 1>}, {transform_indices = @transform_5, window_bounds = array<i64: 1, 8>}]} {
    %c0 = arith.constant 0 : index
    %c0_0 = arith.constant 0 : index
    %0 = vector.load %arg1[%c0, %c0_0] : memref<8x32xf32, #tpu.memory_space<vmem>>, vector<8x32xf32>
    %c0_1 = arith.constant 0 : index
    %c0_2 = arith.constant 0 : index
    %1 = vector.load %arg2[%c0_1, %c0_2] : memref<32x8xf32, #tpu.memory_space<vmem>>, vector<32x8xf32>
    %cst = arith.constant dense<0.000000e+00> : vector<8x8xf32>
    %2 = tpu.matmul %0, %1, %cst {dimension_numbers = #tpu.dot_dimension_numbers<[1], [0], [0], [1], [0, 0, 1, 1], [], []>} : vector<8x32xf32>, vector<32x8xf32>, vector<8x8xf32> -> vector<8x8xf32>
    %c0_3 = arith.constant 0 : index
    %c0_4 = arith.constant 0 : index
    %3 = vector.load %arg3[%c0_3, %c0_4] : memref<1x8xf32, #tpu.memory_space<vmem>>, vector<1x8xf32>
    %4 = vector.broadcast %3 : vector<1x8xf32> to vector<8x8xf32>
    %5 = arith.addf %2, %4 : vector<8x8xf32>
    %cst_5 = arith.constant 0.000000e+00 : f32
    %6 = vector.broadcast %cst_5 : f32 to vector<8x8xf32>
    %7 = arith.maximumf %5, %6 : vector<8x8xf32>
    %c0_6 = arith.constant 0 : index
    %c0_7 = arith.constant 0 : index
    %8 = vector.load %arg4[%c0_6, %c0_7] : memref<1x8xf32, #tpu.memory_space<vmem>>, vector<1x8xf32>
    %cst_8 = arith.constant dense<0.000000e+00> : vector<1x8xf32>
    %9 = tpu.matmul %8, %7, %cst_8 {dimension_numbers = #tpu.dot_dimension_numbers<[1], [1], [0], [0], [0, 0, 1, 0], [], []>} : vector<1x8xf32>, vector<8x8xf32>, vector<1x8xf32> -> vector<1x8xf32>
    %c0_9 = arith.constant 0 : index
    %c0_10 = arith.constant 0 : index
    %10 = vector.load %arg5[%c0_9, %c0_10] : memref<1x1xf32, #tpu.memory_space<vmem>>, vector<1x1xf32>
    %11 = vector.broadcast %10 : vector<1x1xf32> to vector<1x8xf32>
    %12 = arith.addf %9, %11 : vector<1x8xf32>
    %cst_11 = arith.constant 0.000000e+00 : f32
    %13 = vector.broadcast %cst_11 : f32 to vector<1x8xf32>
    %14 = arith.maximumf %12, %13 : vector<1x8xf32>
    %cst_12 = arith.constant 0.000000e+00 : f32
    %15 = vector.broadcast %cst_12 : f32 to vector<1x8xf32>
    %16 = arith.subf %15, %14 : vector<1x8xf32>
    %17 = math.exp %16 : vector<1x8xf32>
    %cst_13 = arith.constant 1.000000e+00 : f32
    %18 = vector.broadcast %cst_13 : f32 to vector<1x8xf32>
    %19 = arith.addf %18, %17 : vector<1x8xf32>
    %cst_14 = arith.constant 1.000000e+00 : f32
    %20 = vector.broadcast %cst_14 : f32 to vector<1x8xf32>
    %21 = arith.divf %20, %19 : vector<1x8xf32>
    %c0_15 = arith.constant 0 : index
    %c0_16 = arith.constant 0 : index
    %22 = vector.load %arg6[%c0_15, %c0_16] : memref<1x8xf32, #tpu.memory_space<vmem>>, vector<1x8xf32>
    tpu.vector_store %arg6[%c0_15, %c0_16], %21 {strides = array<i32>} : memref<1x8xf32, #tpu.memory_space<vmem>>, vector<1x8xf32>,
    return
  }
  func.func @transform_0(%arg0: i32) -> (i32, i32) {
    %c0_i32 = arith.constant 0 : i32
    %c0_i32_0 = arith.constant 0 : i32
    return %arg0, %c0_i32 : i32, i32
  }
  func.func @transform_1(%arg0: i32) -> (i32, i32) {
    %c0_i32 = arith.constant 0 : i32
    %c0_i32_0 = arith.constant 0 : i32
    %c0_i32_1 = arith.constant 0 : i32
    return %c0_i32, %c0_i32_0 : i32, i32
  }
  func.func @transform_2(%arg0: i32) -> (i32, i32) {
    %c0_i32 = arith.constant 0 : i32
    %c0_i32_0 = arith.constant 0 : i32
    %c0_i32_1 = arith.constant 0 : i32
    return %c0_i32, %c0_i32_0 : i32, i32
  }
  func.func @transform_3(%arg0: i32) -> (i32, i32) {
    %c0_i32 = arith.constant 0 : i32
    %c0_i32_0 = arith.constant 0 : i32
    %c0_i32_1 = arith.constant 0 : i32
    return %c0_i32, %c0_i32_0 : i32, i32
  }
  func.func @transform_4(%arg0: i32) -> (i32, i32) {
    %c0_i32 = arith.constant 0 : i32
    %c0_i32_0 = arith.constant 0 : i32
    %c0_i32_1 = arith.constant 0 : i32
    return %c0_i32, %c0_i32_0 : i32, i32
  }
  func.func @transform_5(%arg0: i32) -> (i32, i32) {
    %c0_i32 = arith.constant 0 : i32
    %c0_i32_0 = arith.constant 0 : i32
    return %c0_i32, %arg0 : i32, i32
  }
}

</mosaic_0001>

<bundles_post_ra>
// kernel: discriminator_shifted.1
= control target key start
LH: loop header
LB: loop body
LE: loop exit
PB: predicated region body
PF: predicated region fallthrough
CT: control target
= control target key end

     0   :  { %s340_s0 = inlined_call_operand.vmem [shape: f32[8,32], index: 0, kind: input, shape index: {}]   ;;  %s341_s1 = inlined_call_operand.vmem [shape: f32[32,8], index: 1, kind: input, shape index: {}]   ;;  %s342_s2 = inlined_call_operand.vmem [shape: f32[1,8], index: 2, kind: input, shape index: {}]   ;;  %s343_s3 = inlined_call_operand.vmem [shape: f32[1,8], index: 3, kind: input, shape index: {}]   ;;  %s344_s4 = inlined_call_operand.<no memory space> [shape: f32[1,1], index: 4, kind: input, shape index: {}]   ;;  %s345_s5 = inlined_call_operand.hbm [shape: f32[1,8], index: 5, kind: output, shape index: {}]  }
   0x1   :  { %v10_v0 = vstv %s344_s4 }
   0x2   :  { %11 = vst [vmem:[#allocation2] sm:$0x1] %v10_v0 }
   0x3   :  { %v27_v1 = vld [vmem:[%s341_s1 + $0x18] sm:$0xff]  ;;  %v279_v2 = vmov 0.0   ;;  %v26_v3 = vld [vmem:[%s341_s1 + $0x10] sm:$0xff]  ;;  %vm280_vm0 = vmmov 0  }
   0x4   :  { %232 = vmatprep.subr.mxu0 %v279_v2  ;;  %240 = vmatprep.mubr.msk.f32.mxu0 %vm280_vm0, %v279_v2 }
   0x5   :  { %233 = vmatpush3.msra.mxu0 %v27_v1  ;;  %243 = vmatprep.subr.mxu1 %v279_v2 }
   0x6   :  { %12 = vsyncpa [#allocation4], 0  ;;  %234 = vmatprep.subr.mxu0 %v279_v2  ;;  %v25_v4 = vld [vmem:[%s341_s1 + $0x8] sm:$0xff]  ;;  %245 = vmatprep.mubr.msk.f32.mxu1 %vm280_vm0, %v279_v2  ;;  %v24_v5 = vld [vmem:[%s341_s1] sm:$0xff]  ;;  %vm35_vm1 = vcmask 261120   ;;  %v281_v8 = vmov 0   ;;  %v117_v15 = vlaneseq }
   0x7   :  { %235 = vmatpush3.msra.mxu0 %v26_v3  ;;  %v23_v6 = vld [vmem:[%s340_s0] sm:$0xff]  ;;  %252 = vset.pattern.permute.xlu0 %v281_v8  ;;  %vm121_vm2 = vcmask 64512   ;;  %vm205_vm3 = vcmask 57344  }
   0x8   :  { %236 = vmatprep.subr.mxu0 %v279_v2  ;;  %v221_v9 = vld [vmem:[%s342_s2] ss:$0 sm:$0xff]  ;;  %v118_v16 = vshrl.u32 %v117_v15, 7  ;;  %s282_s2 = smov [#allocation3]  }
   0x9   :  { %237 = vmatpush3.msra.mxu0 %v25_v4  ;;  %v111_v7 = vld [vmem:[#allocation2] sm:$0x1]  ;;  %s213_s6 = sshll.u32 %s282_s2, 4  ;;  %s214_s6 = int_to_ptr.vmem [resolvable:$true] %s213_s6 }
   0xa   :  { %238 = vmatprep.subr.mxu0 %v279_v2  ;;  %114 = vperm.xlu0 %252, %v111_v7   ;;  %v110_v14 = vld [vmem:[%s343_s3] sm:$0x1]  ;;  %v119_v17 = vsub.s32 0, %v118_v16  ;;  %s257_s3 = scalar_lea.vmem %s214_s6, 16  ;;  %s261_s7 = scalar_lea.vmem %s214_s6, 32 }
   0xb   :  { %239 = vmatpush3.msra.mxu0 %v24_v5  ;;  %p258_p0 = scmp.ne.s32.totalorder %s214_s6, %s257_s3  ;;  %p262_p1 = scmp.lt.s32.totalorder %s214_s6, %s214_s6 }
   0xc   :  { %241 = vmatmul.mubr.msk.f32.vlgmr.msra.gmra.mxu0 %vm35_vm1, %v23_v6  ;;  %p263_p2 = scmp.lt.s32.totalorder %s261_s7, %s257_s3 }
   0xe   :  { %p264_p3 = por %p263_p2, %p262_p1 }
  0x10   :  { %p265_p4 = pnand %p264_p3, %p258_p0 }
  0x85   :  { %v115_v18 = vpop.permute.xlu0 %114 }
  0x86   :  { %v120_v19 = vrot.slane %v115_v18, %v119_v17 }
  0xcc   :  { %v105_v10 = vpop.f32.mrf.mxu0 }
  0xcd   :  { %v106_v11 = vadd.f32 %v221_v9, %v105_v10 }
  0xce   :  { %v242_v12 = vpop.f32.mrf.mxu0 }
  0xcf   :  { %v109_v13 = vmax.f32 %v106_v11, 0.0 }
  0xd1   :  { %244 = vmatpush3.xpose.msk.msra.mxu1 %vm121_vm2, %v109_v13 }
  0xd4   :  { %246 = vmatmul.mubr.msk.f32.vlgmr.msra.gmra.mxu1 %vm121_vm2, %v110_v14 }
 0x194   :  { %v194_v20 = vpop.f32.mrf.mxu1 }
 0x195   :  { %v195_v21 = vadd.f32 %v194_v20, %v120_v19 }
 0x196   :  { %v247_v22 = vpop.f32.mrf.mxu1 }
 0x197   :  { %v198_v23 = vmax.f32 %v195_v21, 0.0 }
 0x199   :  { %v199_v24 = vsub.f32 0.0, %v198_v23 }
 0x19b   :  { %v200_v25 = vmul.f32 1.442695, %v199_v24 }
 0x19d   :  { %253 = vpow2.f32 %v200_v25 }
 0x1aa   :  { %v254_v26 = vpop.eup %253 }
 0x1ab   :  { %v202_v27 = vadd.f32 1.0, %v254_v26 }
 0x1ad   :  { %255 = vrcp.f32 %v202_v27 }
 0x1ba   :  { %v256_v28 = vpop.eup %255 }
 0x1bb   :  { %206 = vst.msk [vmem:[#allocation3] sm:$0x1] %vm205_vm3, %v256_v28 }
 0x1bc   :  { %268 = shalt.err (!%p265_p4)
}
 0x1bd   :  { %216 = dma.vmem_to_hbm [thread:$0]  %s214_s6, 16, %s345_s5, [#allocation4]  }
 0x1be   :  { %277 = dma.done.wait [#allocation4], 16  }
 0x1bf   :  { %278 = vsyncadd [#allocation4], 4294967280 }
 0x1c0   :  { %220 = vsyncpa [#allocation4], 1 }

</bundles_post_ra>
